<compile_context>
chip_gen: v7x
topology: tpu7x:2x2x1
jax: 0.10.0
libtpu: 0.0.40
codegen_flags: <defaults>
</compile_context>

<pallas_src>
import functools

import jax
import jax.numpy as jnp
from jax import lax
from jax.experimental import pallas as pl
from jax.experimental.pallas import tpu as pltpu


# ---------------------------------------------------------------------------
# Generation-aware knobs
# ---------------------------------------------------------------------------
@functools.lru_cache(maxsize=None)
def _device_kind() -> str:
    try:
        return jax.devices()[0].device_kind.lower()
    except Exception:
        return ""


@functools.lru_cache(maxsize=None)
def _vmem_limit_bytes() -> int:
    """Scoped-VMEM budget: 3/4 of physical VMEM (48 MiB on v7x's 64 MiB,
    96 MiB on v5e/v6e's 128 MiB), leaving headroom for compiler scratch."""
    try:
        cap = int(pltpu.get_tpu_info().vmem_capacity_bytes)
    except Exception:
        cap = 0
    if cap <= 0:
        cap = 64 * 1024 * 1024        # conservative default (v7x-sized)
    return (cap * 3) // 4


def _default_flash_q_tile() -> int:
    """v6e is HBM-bound on the K/V re-stream -> a bigger q tile halves it.
    v5e already exceeds its roofline at 256; v7x is VMEM-bound at 64 MiB."""
    return 512 if "v6" in _device_kind() else 256


def _sublane_quantum(dtype) -> int:
    """Native sublane tiling: 8 for f32, 16 for bf16, 32 for int8/fp8."""
    return max(8, 32 // jnp.dtype(dtype).itemsize)


def _pick_tile(dim, target, quantum):
    """Largest tile <= target that divides dim and is a multiple of quantum;
    falls back to the full dimension (always a legal block shape)."""
    # TODO(synk): add a pad/mask path for ragged dims instead of falling back
    # to a full-size block (which can exceed VMEM for large prime-ish N).
    if dim <= target:
        return dim
    t = (target // quantum) * quantum
    while t >= quantum:
        if dim % t == 0:
            return t
        t -= quantum
    return dim


def _maybe_buffered(block_shape, index_map, depth=3):
    """BlockSpec with N-deep pipelining when the installed JAX supports it."""
    if hasattr(pl, "Buffered"):
        try:
            return pl.BlockSpec(block_shape, index_map,
                                pipeline_mode=pl.Buffered(depth))
        except TypeError:
            pass
    return pl.BlockSpec(block_shape, index_map)


# ---------------------------------------------------------------------------
# Kernel 1: fused QKV projection, head-major writeout, scale folded into q
# ---------------------------------------------------------------------------
def _qkv_head_major_kernel(x_ref, w_ref, o_ref, *, n_heads, dim_heads, q_scale):
    plane = pl.program_id(2)            # 0 = q, 1 = k, 2 = v
    # (tm, D) . (D, D)^T on the MXU: full-K contraction, no K grid axis, and
    # w stays in torch (out, in) layout (W^T never materialized in HBM).
    acc = lax.dot_general(
        x_ref[0], w_ref[...],
        dimension_numbers=(((1,), (1,)), ((), ())),
        preferred_element_type=jnp.float32)
    # Fold the softmax scale into the q plane while the tile is live; k/v are
    # multiplied by 1.0 (negligible VPU work vs. the matmul).
    acc = acc * jnp.where(plane == 0, q_scale, 1.0).astype(jnp.float32)
    tm = acc.shape[0]
    # Head-major writeout: one XLU transpose per output tile (amortized) so
    # the attention kernel never reshapes/transposes K or V per kv step.
    acc = jnp.transpose(acc.reshape(tm, n_heads, dim_heads), (1, 0, 2))
    o_ref[0, 0] = acc.astype(o_ref.dtype)


def pallas_qkv_projection(x, w_qkv, dim_heads, q_scale, *, tm_target=512):
    """(B, N, D) @ w_qkv.T written head-major as (3, B, H, N, dh); q pre-scaled."""
    B, N, D = x.shape
    O, K = w_qkv.shape
    assert O == 3 * D and K == D and D % dim_heads == 0
    H = D // dim_heads
    tm = _pick_tile(N, tm_target, _sublane_quantum(x.dtype))
    grid = (B, N // tm, 3)              # plane innermost -> x block stays resident
    itemsize = jnp.dtype(x.dtype).itemsize
    cost = pl.CostEstimate(
        flops=int(2 * B * N * D * O),
        transcendentals=0,
        bytes_accessed=int(
            (B * N * D                        # x (fetched once per row tile)
             + 3 * D * D * B * (N // tm)      # w re-streamed per row tile
             + 3 * B * N * D) * itemsize))    # head-major output
    kern = functools.partial(_qkv_head_major_kernel, n_heads=H,
                             dim_heads=dim_heads, q_scale=q_scale)
    return pl.pallas_call(
        kern,
        out_shape=jax.ShapeDtypeStruct((3, B, H, N, dim_heads), x.dtype),
        grid_spec=pltpu.PrefetchScalarGridSpec(
            num_scalar_prefetch=0,
            grid=grid,
            in_specs=[
                pl.BlockSpec((1, tm, D), lambda b, i, j: (b, i, 0)),
                pl.BlockSpec((D, D), lambda b, i, j: (j, 0)),
            ],
            out_specs=pl.BlockSpec((1, 1, H, tm, dim_heads),
                                   lambda b, i, j: (j, b, 0, i, 0)),
        ),
        compiler_params=pltpu.CompilerParams(
            dimension_semantics=("parallel", "parallel", "arbitrary"),
            vmem_limit_bytes=_vmem_limit_bytes()),
        cost_estimate=cost,
    )(x, w_qkv)


# ---------------------------------------------------------------------------
# Kernel 2: flash attention (online softmax) with fused to_out projection
# ---------------------------------------------------------------------------
def _flash_attn_kernel(q_ref, k_ref, v_ref, wo_ref, o_ref,
                       m_ref, l_ref, acc_ref, *, exp_dtype):
    kv = pl.program_id(2)

    @pl.when(kv == 0)
    def _init():
        m_ref[...] = jnp.full_like(m_ref, -jnp.inf)
        l_ref[...] = jnp.zeros_like(l_ref)
        acc_ref[...] = jnp.zeros_like(acc_ref)

    q = q_ref[0, 0]                     # (H, tq, dh), pre-scaled by 1/sqrt(dh)
    k = k_ref[0, 0]                     # (H, tkv, dh) head-major, no transpose
    v = v_ref[0, 0]

    # (H, tq, tkv) fp32 scores for this kv block only (never (N, N)).
    s = jnp.einsum('hqd,hkd->hqk', q, k, preferred_element_type=jnp.float32)

    m_prev = m_ref[...]
    m_new = jnp.maximum(m_prev, jnp.max(s, axis=-1, keepdims=True))
    alpha = jnp.exp(m_prev - m_new)                  # fp32 rescale factor
    # exp on bf16 operands on v6e/v7x (EUP-bound regime for small dh); the
    # running max/sum and the output accumulator stay fp32.
    p = jnp.exp((s - m_new).astype(exp_dtype))
    l_ref[...] = alpha * l_ref[...] + jnp.sum(p.astype(jnp.float32), axis=-1,
                                              keepdims=True)
    acc_ref[...] = alpha * acc_ref[...] + jnp.einsum(
        'hqk,hkd->hqd', p.astype(v.dtype), v,
        preferred_element_type=jnp.float32)
    m_ref[...] = m_new

    @pl.when(kv == pl.num_programs(2) - 1)
    def _finalize():
        # Exact reciprocal: runs once per (batch, q block) so approx buys nothing.
        inv_l = pl.reciprocal(l_ref[...])
        o = acc_ref[...] * inv_l                     # (H, tq, dh) fp32
        h, tq, dh = o.shape
        # Merge heads into a lane-dense (tq, D) slab and apply to_out with the
        # VMEM-resident w_out -> no (B, N, D) HBM round trip for the attn out.
        o = jnp.transpose(o, (1, 0, 2)).reshape(tq, h * dh).astype(wo_ref.dtype)
        out = lax.dot_general(o, wo_ref[...],
                              dimension_numbers=(((1,), (1,)), ((), ())),
                              preferred_element_type=jnp.float32)
        o_ref[0] = out.astype(o_ref.dtype)


def pallas_flash_attention(qkv, w_out, *, tq_target=None, tkv_target=256):
    """qkv: (3, B, H, N, dh) head-major (q pre-scaled).  Returns
    (softmax(q k^T) v) @ w_out^T as (B, N, D)."""
    _, B, H, N, dh = qkv.shape
    D = H * dh
    assert w_out.shape == (D, D)
    if tq_target is None:
        tq_target = _default_flash_q_tile()
    sq = _sublane_quantum(qkv.dtype)
    tq = _pick_tile(N, tq_target, sq)
    tkv = _pick_tile(N, tkv_target, sq)
    grid = (B, N // tq, N // tkv)

    kind = _device_kind()
    exp_dtype = (jnp.bfloat16
                 if (qkv.dtype == jnp.bfloat16
                     and any(t in kind for t in ("v6", "v7", "7x")))
                 else jnp.float32)

    itemsize = jnp.dtype(qkv.dtype).itemsize
    cost = pl.CostEstimate(
        flops=int(4 * B * H * N * N * dh + 2 * B * N * D * D),
        transcendentals=int(B * H * N * N),
        bytes_accessed=int(
            (B * N * D                         # q (resident across kv axis)
             + 2 * B * N * D * (N // tq)       # k/v re-streamed per q block
             + B * N * D                       # output
             + D * D) * itemsize))             # w_out (resident)
    kern = functools.partial(_flash_attn_kernel, exp_dtype=exp_dtype)
    return pl.pallas_call(
        kern,
        out_shape=jax.ShapeDtypeStruct((B, N, D), qkv.dtype),
        grid_spec=pltpu.PrefetchScalarGridSpec(
            num_scalar_prefetch=0,
            grid=grid,
            in_specs=[
                pl.BlockSpec((1, 1, H, tq, dh),
                             lambda b, qi, ki: (0, b, 0, qi, 0)),
                _maybe_buffered((1, 1, H, tkv, dh),
                                lambda b, qi, ki: (1, b, 0, ki, 0)),
                _maybe_buffered((1, 1, H, tkv, dh),
                                lambda b, qi, ki: (2, b, 0, ki, 0)),
                pl.BlockSpec((D, D), lambda b, qi, ki: (0, 0)),
            ],
            out_specs=pl.BlockSpec((1, tq, D), lambda b, qi, ki: (b, qi, 0)),
            scratch_shapes=[
                pltpu.VMEM((H, tq, 1), jnp.float32),    # running max
                pltpu.VMEM((H, tq, 1), jnp.float32),    # running sum
                pltpu.VMEM((H, tq, dh), jnp.float32),   # fp32 output acc
            ],
        ),
        compiler_params=pltpu.CompilerParams(
            dimension_semantics=("parallel", "parallel", "arbitrary"),
            vmem_limit_bytes=_vmem_limit_bytes()),
        cost_estimate=cost,
    )(qkv, qkv, qkv, w_out)


# ---------------------------------------------------------------------------
# Full forward pass
# ---------------------------------------------------------------------------
def attention_forward(x, w_qkv, w_out, dim_heads, *, compute_dtype=None):
    """Equivalent of Attention.forward(x) for the default self-attention config.

    x:      (B, N, D)
    w_qkv:  (3D, D)  -- to_qkv.weight (torch layout: out_features, in_features)
    w_out:  (D, D)   -- to_out.weight
    compute_dtype: optional (e.g. jnp.bfloat16) to run the MXU at peak rate
        with halved HBM traffic; softmax state stays fp32 either way.
    """
    if compute_dtype is not None:
        x = x.astype(compute_dtype)
        w_qkv = w_qkv.astype(compute_dtype)
        w_out = w_out.astype(compute_dtype)
    B, N, D = x.shape
    assert D % dim_heads == 0
    scale = 1.0 / (dim_heads ** 0.5)
    qkv = pallas_qkv_projection(x, w_qkv, dim_heads, scale)   # (3, B, H, N, dh)
    return pallas_flash_attention(qkv, w_out)                 # (B, N, D)


# ---------------------------------------------------------------------------
# Pure-JAX reference (for correctness check only)
# ---------------------------------------------------------------------------
def attention_reference(x, w_qkv, w_out, dim_heads):
    B, N, D = x.shape
    H = D // dim_heads
    Dh = dim_heads
    qkv = x @ w_qkv.T
    q, k, v = qkv[..., :D], qkv[..., D:2 * D], qkv[..., 2 * D:]

    def sh(t):
        return t.reshape(B, N, H, Dh).transpose(0, 2, 1, 3)

    q, k, v = map(sh, (q, k, v))
    scale = 1.0 / (Dh ** 0.5)
    dots = jnp.einsum('bhid,bhjd->bhij', q, k) * scale
    attn = jax.nn.softmax(dots.astype(jnp.float32), axis=-1).astype(dots.dtype)
    out = jnp.einsum('bhij,bhjd->bhid', attn, v)
    out = out.transpose(0, 2, 1, 3).reshape(B, N, D)
    return out @ w_out.T


if __name__ == "__main__":
    # Small shapes consistent with the module: dim=32, dim_heads=16 -> 2 heads.
    B, N, D, Dh = 2, 16, 32, 16

    key = jax.random.PRNGKey(0)
    kx, kq, ko = jax.random.split(key, 3)

    x = jax.random.normal(kx, (B, N, D), dtype=jnp.float32)
    # Deterministic non-zero init (zero_init_output=True would zero to_out and
    # make the output trivially zero; this is zero_init_output=False behaviour).
    w_qkv = jax.random.normal(kq, (3 * D, D), dtype=jnp.float32) * 0.05
    w_out = jax.random.normal(ko, (D, D), dtype=jnp.float32) * 0.05

    ref = attention_reference(x, w_qkv, w_out, Dh)

    # fp32 path: matches the module's default dtype semantics.
    out = jax.block_until_ready(attention_forward(x, w_qkv, w_out, Dh))
    assert out.shape == (B, N, D)
    assert jnp.allclose(out, ref, atol=1e-3, rtol=1e-3), "fp32 mismatch vs reference"

    # bf16 compute path (production setting from the perf review): peak MXU
    # rate, half the HBM traffic; fp32 softmax state and accumulation.
    out_bf16 = jax.block_until_ready(
        attention_forward(x, w_qkv, w_out, Dh, compute_dtype=jnp.bfloat16))
    assert out_bf16.shape == (B, N, D)
    assert jnp.allclose(out_bf16.astype(jnp.float32), ref, atol=3e-2, rtol=3e-2), \
        "bf16 mismatch vs reference"

    print("KERNEL_OK")
</pallas_src>

<mosaic_0001>
module attributes {stable_mosaic.version = 11 : i64} {
  func.func @_qkv_head_major_kernel(%arg0: i32, %arg1: i32, %arg2: i32, %arg3: memref<1x16x32xf32, #tpu.memory_space<vmem>>, %arg4: memref<32x32xf32, #tpu.memory_space<vmem>>, %arg5: memref<1x1x2x16x16xf32, #tpu.memory_space<vmem>>) attributes {dimension_semantics = [#tpu.dimension_semantics<parallel>, #tpu.dimension_semantics<parallel>, #tpu.dimension_semantics<arbitrary>], iteration_bounds = array<i64: 2, 1, 3>, scalar_prefetch = 0 : i64, scratch_operands = 0 : i64, tpu.core_type = #tpu.core_type<tc>, window_params = [{transform_indices = @transform_0, window_bounds = array<i64: 1, 16, 32>}, {transform_indices = @transform_1, window_bounds = array<i64: 32, 32>}, {transform_indices = @transform_2, window_bounds = array<i64: 1, 1, 2, 16, 16>}]} {
    %c0 = arith.constant 0 : index
    %c0_0 = arith.constant 0 : index
    %c0_1 = arith.constant 0 : index
    %0 = vector.load %arg3[%c0, %c0_0, %c0_1] : memref<1x16x32xf32, #tpu.memory_space<vmem>>, vector<1x16x32xf32>
    %1 = vector.shape_cast %0 : vector<1x16x32xf32> to vector<16x32xf32>
    %c0_2 = arith.constant 0 : index
    %c0_3 = arith.constant 0 : index
    %2 = vector.load %arg4[%c0_2, %c0_3] : memref<32x32xf32, #tpu.memory_space<vmem>>, vector<32x32xf32>
    %cst = arith.constant dense<0.000000e+00> : vector<16x32xf32>
    %3 = tpu.matmul %1, %2, %cst {dimension_numbers = #tpu.dot_dimension_numbers<[1], [1], [0], [0], [0, 0, 1, 0], [], []>} : vector<16x32xf32>, vector<32x32xf32>, vector<16x32xf32> -> vector<16x32xf32>
    %c0_i32 = arith.constant 0 : i32
    %4 = arith.cmpi eq, %arg2, %c0_i32 : i32
    %cst_4 = arith.constant 2.500000e-01 : f32
    %cst_5 = arith.constant 1.000000e+00 : f32
    %5 = arith.select %4, %cst_4, %cst_5 : f32
    %6 = vector.broadcast %5 : f32 to vector<16x32xf32>
    %7 = arith.mulf %3, %6 : vector<16x32xf32>
    %8 = vector.shape_cast %7 : vector<16x32xf32> to vector<16x2x16xf32>
    %9 = tpu.transpose %8, [1, 0, 2] : vector<16x2x16xf32> -> vector<2x16x16xf32>
    %c0_6 = arith.constant 0 : index
    %c0_7 = arith.constant 0 : index
    %c0_8 = arith.constant 0 : index
    %c0_9 = arith.constant 0 : index
    %c0_10 = arith.constant 0 : index
    %10 = vector.load %arg5[%c0_6, %c0_7, %c0_8, %c0_9, %c0_10] : memref<1x1x2x16x16xf32, #tpu.memory_space<vmem>>, vector<1x1x2x16x16xf32>
    %11 = vector.shape_cast %10 : vector<1x1x2x16x16xf32> to vector<2x16x16xf32>
    %12 = vector.shape_cast %9 : vector<2x16x16xf32> to vector<1x1x2x16x16xf32>
    tpu.vector_store %arg5[%c0_6, %c0_7, %c0_8, %c0_9, %c0_10], %12 {strides = array<i32>} : memref<1x1x2x16x16xf32, #tpu.memory_space<vmem>>, vector<1x1x2x16x16xf32>,
    return
  }
  func.func @transform_0(%arg0: i32, %arg1: i32, %arg2: i32) -> (i32, i32, i32) {
    %c0_i32 = arith.constant 0 : i32
    %c0_i32_0 = arith.constant 0 : i32
    return %arg0, %arg1, %c0_i32 : i32, i32, i32
  }
  func.func @transform_1(%arg0: i32, %arg1: i32, %arg2: i32) -> (i32, i32) {
    %c0_i32 = arith.constant 0 : i32
    %c0_i32_0 = arith.constant 0 : i32
    return %arg2, %c0_i32 : i32, i32
  }
  func.func @transform_2(%arg0: i32, %arg1: i32, %arg2: i32) -> (i32, i32, i32, i32, i32) {
    %c0_i32 = arith.constant 0 : i32
    %c0_i32_0 = arith.constant 0 : i32
    %c0_i32_1 = arith.constant 0 : i32
    return %arg2, %arg0, %c0_i32, %arg1, %c0_i32_0 : i32, i32, i32, i32, i32
  }
}

</mosaic_0001>

<bundles_post_ra>
// kernel: tpu_custom_call.1
= control target key start
LH: loop header
LB: loop body
LE: loop exit
PB: predicated region body
PF: predicated region fallthrough
CT: control target
= control target key end

     0   :  { %7 = vsyncpa [#allocation3], 0  ;;  %s1091_s0 = inlined_call_operand.vmem [shape: f32[2,16,32], index: 0, kind: input, shape index: {}]   ;;  %s1092_s1 = inlined_call_operand.vmem [shape: f32[96,32], index: 1, kind: input, shape index: {}]   ;;  %s1093_s2 = inlined_call_operand.hbm [shape: f32[3,2,2,16,16], index: 2, kind: output, shape index: {}]  }
   0x1   :  { %9 = vsyncpa [#allocation3 + $0x1], 0  ;;  %s922_s9 = smov 0   ;;  %s924_s10 = smov 0  }
   0x2   :  { %s926_s11 = smov 0   ;;  %s928_s12 = smov 0  }
   0x3   :  { %s930_s13 = smov 0   ;;  %s932_s14 = smov 0  }
   0x4   :  { %s934_s15 = smov 0   ;;  %s936_s16 = smov 0  }
   0x5 LB: > { %s671_s17 = sadd.s32 4294967295, %s898_s16   ;;  %s672_s18 = sadd.s32 4294967294, %s898_s16   ;;  %s898_s16 = sphi %s936_s16, %s15_s16   ;;  %s894_s15 = sphi %s934_s15, %s1102_s15   ;;  %s890_s14 = sphi %s932_s14, %s1101_s14   ;;  %s886_s13 = sphi %s930_s13, %s1100_s13   ;;  %s882_s12 = sphi %s928_s12, %s1099_s12   ;;  %s878_s11 = sphi %s926_s11, %s1098_s11   ;;  %s874_s10 = sphi %s924_s10, %s1097_s10   ;;  %s870_s9 = sphi %s922_s9, %s1096_s9  }
   0x6   : > { %s27_s19 = sadd.s32 1, %s890_s14  ;;  %s34_s20 = sadd.s32 1, %s894_s15 }
   0x7   : > { %p28_p0 = scmp.ge.s32.totalorder %s27_s19, 3  ;;  %p109_p1 = scmp.ne.s32.totalorder %s878_s11, %s874_s10 }
   0x8   : > { %p110_p2 = scmp.eq.s32.totalorder %s671_s17, 5  ;;  %p115_p5 = scmp.ne.s32.totalorder %s874_s10, %s870_s9 }
   0x9   : > { %s1104_s19 = smov (%p28_p0, %s27_s19), 0  ;;  %s1106_s20 = smov (!%p28_p0, %s34_s20), %s894_s15 }
   0xa   : > { %s92_s21 = ssub.s32 %s890_s14, %s1104_s19  ;;  %p973_p3 = por %p110_p2, %p109_p1 }
   0xb   : > { %p36_p4 = scmp.ge.s32.totalorder %s1106_s20, 2  ;;  %p116_p6 = scmp.eq.s32.totalorder %s672_s18, 5 }
   0xc   : > { %p675_p7 = scmp.ge.s32.totalorder %s898_s16, 1  ;;  %p156_p9 = scmp.lt.s32.totalorder %s898_s16, 7 }
   0xd   : > { %s1108_s20 = smov (%p36_p4, %s1106_s20), 0  ;;  %p982_p8 = por %p116_p6, %p115_p5 }
   0xe   : > { %s93_s24 = ssub.s32 %s894_s15, %s1108_s20  ;;  %s99_s25 = sadd.s32 1, %s878_s11 }
   0xf   : > { %s94_s26 = sor.u32 %s93_s24, %s92_s21  ;;  %p157_p10 = pnand %p675_p7, %p156_p9 }
  0x10   : > { %p97_p11 = scmp.eq.s32.totalorder %s94_s26, 0  ;;  %s679_s28 = sshll.u32 (!%p157_p10), %s882_s12, 2  ;;  %vm210_vm0 = vcmask (!%p157_p10), 261120   ;;  %v901_v13 = vmov (!%p157_p10), 1983009808   ;;  %v321_v15 = vlaneseq (!%p157_p10)  ;;  %v903_v22 = vmov (!%p157_p10), 0.0  }
  0x11   : > { %160 = sbr.rel (%p157_p10) target bundleno = 416 (0x1a0), region = 28  ;;  %p188_p12 = scmp.lt.s32.totalorder (!%p157_p10), %s886_s13, 1  ;;  %vm716_vm1 = vmpackc.low (!%p157_p10), %vm210_vm0, %vm210_vm0  ;;  %v319_v14 = vunpack.c.l.s4 (!%p157_p10), %v901_v13  ;;  %v902_v18 = vmov (!%p157_p10), 1934713408   ;;  %vm549_vm2 = vcmask (!%p157_p10), 130048  }
  0x12   : > { %s991_s27 = scalar_select %p97_p11, %s878_s11, %s99_s25  }
  0x13   : > { %p198_p13 = scmp.lt.s32.totalorder (!%p157_p10), %s679_s28, 11  ;;  %p304_p0 = scmp.eq.s32.totalorder (!%p157_p10), %s882_s12, 0  ;;  %v320_v16 = vunpack.c.0.s8 (!%p157_p10), %v319_v14  ;;  %v322_v17 = vshrl.u32 (!%p157_p10), %v321_v15, 7  ;;  %v350_v19 = vunpack.c.l.s4 (!%p157_p10), %v902_v18 }
  0x14   : > { %s900_s21 = smov (!%p157_p10), 112   ;;  %s184_s24 = sand.u32 (!%p157_p10), 1, %s874_s10  }
  0x15   : > { %v323_v20 = vsub.s32 (!%p157_p10), %v320_v16, %v322_v17  ;;  %v351_v21 = vunpack.c.0.s8 (!%p157_p10), %v350_v19  ;;  %s692_s25 = sshll.u32 (!%p157_p10), %s886_s13, 2  ;;  %s693_s26 = sshll.u32 (!%p157_p10), %s882_s12, 3 }
  0x16   : > { %s904_s8 = smov (!%p157_p10), [#allocation2]  }
  0x17   : > { %v1007_v26 = vsub.s32 (!%p157_p10), %v351_v21, %v322_v17 }
  0x18   : > { %s189_s29 = scalar_select %p188_p12, %s886_s13, 1 }
  0x19   : > { %s1110_s28 = smov (!%p198_p13, %s679_s28), 11 }
  0x1a   : > { %s697_s30 = sshll.u32 %s189_s29, 4  ;;  %s680_s3 = sshll.u32 %s1110_s28, 3 }
  0x1b   : > { %s195_s6 = scalar_lea.vmem %s1091_s0, %s697_s30  ;;  %s201_s17 = scalar_lea.vmem %s1092_s1, %s680_s3 }
  0x1c   : > { %v204_v0 = vld [vmem:[%s195_s6] sm:$0xff]  ;;  %v207_v2 = vld [vmem:[%s201_s17 + $0x8] sm:$0xff]  ;;  %v208_v3 = vld [vmem:[%s201_s17 + $0x10] sm:$0xff]  ;;  %s305_s18 = scalar_select %p304_p0, 0.25, 1.0 }
  0x1d   : > { %v206_v1 = vld [vmem:[%s201_s17] sm:$0xff]  ;;  %712 = vmatprep.mubr.msk.f32.mxu0 %vm210_vm0, %v204_v0  ;;  %v209_v5 = vld [vmem:[%s201_s17 + $0x18] sm:$0xff]  ;;  %v205_v7 = vld [vmem:[%s195_s6 + $0x8] sm:$0xff]  ;;  %s676_s28 = sshll.u32 %s184_s24, 5  ;;  %s569_s29 = sadd.s32 %s693_s26, %s692_s25 }
  0x1e   : > { %v715_v4 = vpack.c.bf16 %v207_v2, %v206_v1  ;;  %v721_v6 = vpack.c.bf16 %v209_v5, %v208_v3  ;;  %v306_v8 = vstv %s305_s18  ;;  %s694_s12 = sshll.u32 %s569_s29, 7  ;;  %s186_s13 = scalar_lea.vmem [#allocation2], %s676_s28 }
  0x1f   : > { %s572_s30 = sshll.u32 %s186_s13, 4  ;;  %s1031_s5 = scalar_lea.hbm %s1093_s2, %s694_s12  ;;  %s1033_s30 = int_to_ptr.vmem [resolvable:$true] %s572_s30 }
  0x20   : > { %717 = vmatprep.subr.msk.bf16.mxu0 %vm716_vm1, %v715_v4  ;;  %s1039_s6 = scalar_lea.sflag [#allocation3], %s184_s24  ;;  %s804_s7 = scalar_lea.vmem %s1033_s30, 512 }
  0x21   : > { %720 = vmatpush3.bf16.xpose.msk.msra.mxu0 %vm716_vm1, %v715_v4  ;;  %p805_p1 = scmp.ne.s32.totalorder %s1033_s30, %s804_s7  ;;  %s808_s17 = sshll.u32 %s904_s8, 4  ;;  %s809_s17 = int_to_ptr.vmem [resolvable:$false] %s808_s17 }
  0x22   : > { %723 = vmatprep.subr.msk.bf16.mxu0 %vm716_vm1, %v721_v6  ;;  %s810_s18 = scalar_lea.vmem %s809_s17, 1024  ;;  %p811_p5 = scmp.lt.s32.totalorder %s1033_s30, %s809_s17 }
  0x23   : > { %p806_p2 = pnand %p805_p1, %p973_p3  ;;  %p812_p6 = scmp.lt.s32.totalorder %s810_s18, %s804_s7 }
  0x25   : > { %p807_p4 = pneg %p806_p2  ;;  %p813_p7 = por %p812_p6, %p811_p5 }
  0x27   : > { %p814_p9 = pnand %p813_p7, %p807_p4 }
  0x29   : > { %726 = vmatpush3.bf16.xpose.msk.msra.mxu0 %vm716_vm1, %v721_v6 }
  0x30   : > { %713 = vmatmul.mubr.msk.f32.vlgmr.msra.gmra.mrb[0].mxu0 %vm210_vm0, %v205_v7 }
 0x103   : > { %v714_v9 = vpop.f32.mrb[0].mxu0 }
 0x104   : > { %v295_v10 = vpop.f32.mrb[1].mxu0  ;;  %v308_v12 = vmul.f32 %v714_v9, %v306_v8 }
 0x105   : > { %v307_v11 = vmul.f32 %v306_v8, %v295_v10 }
 0x106   : > { %v383_v33 = vcombine.high %v308_v12, %v903_v22  ;;  %v390_v39 = vrot.slane %v308_v12, %v323_v20 }
 0x107   : > { %311 = vrot.lane.b32.xlu0 %v307_v11, %s900_s21  ;;  %v317_v23 = vcombine.high %v307_v11, %v903_v22  ;;  %v324_v25 = vrot.slane %v307_v11, %v323_v20 }
 0x108   : > { %v397_v46 = vrot.slane %v383_v33, %v323_v20 }
 0x109   : > { %v331_v29 = vrot.slane %v317_v23, %v323_v20 }
 0x10b   : > { %313 = vrot.lane.b32.xlu0 %v308_v12, %s900_s21 }
 0x179   : > { %v312_v24 = vpop.permute.xlu0 %311 }
 0x17a   : > { %v332_v27 = vcombine.high %v312_v24, %v903_v22  ;;  %v339_v28 = vrot.slane %v312_v24, %v323_v20 }
 0x17c   : > { %v346_v30 = vrot.slane %v332_v27, %v323_v20  ;;  %v347_v31 = vcombine.low %v324_v25, %v339_v28  ;;  %v348_v32 = vcombine.high %v324_v25, %v339_v28 }
 0x17d   : > { %v314_v34 = vpop.permute.xlu0 %313 }
 0x17e   : > { %v355_v35 = vrot.slane %v347_v31, %v1007_v26  ;;  %v362_v36 = vrot.slane %v348_v32, %v1007_v26  ;;  %v363_v37 = vcombine.low %v331_v29, %v346_v30  ;;  %v364_v38 = vcombine.high %v331_v29, %v346_v30 }
 0x17f   : > { %v398_v40 = vcombine.high %v314_v34, %v903_v22  ;;  %v405_v41 = vrot.slane %v314_v34, %v323_v20 }
 0x180   : > { %v371_v42 = vrot.slane %v363_v37, %v1007_v26  ;;  %v378_v43 = vrot.slane %v364_v38, %v1007_v26  ;;  %v449_v44 = vcombine.low %v355_v35, %v362_v36  ;;  %v687_v45 = vcombine.high %v355_v35, %v362_v36 }
 0x181   : > { %v412_v47 = vrot.slane %v398_v40, %v323_v20  ;;  %v413_v48 = vcombine.low %v390_v39, %v405_v41  ;;  %v414_v49 = vcombine.high %v390_v39, %v405_v41 }
 0x182   : > { %v456_v50 = vrot.slane %v449_v44, %v323_v20  ;;  %v464_v51 = vrot.slane %v687_v45, %v323_v20  ;;  %v465_v52 = vcombine.low %v371_v42, %v378_v43  ;;  %v688_v53 = vcombine.high %v371_v42, %v378_v43 }
 0x183   : > { %v421_v54 = vrot.slane %v413_v48, %v1007_v26  ;;  %v428_v55 = vrot.slane %v414_v49, %v1007_v26  ;;  %v429_v56 = vcombine.low %v397_v46, %v412_v47  ;;  %v430_v57 = vcombine.high %v397_v46, %v412_v47 }
 0x184   : > { %v472_v58 = vrot.slane %v465_v52, %v323_v20  ;;  %v480_v59 = vrot.slane %v688_v53, %v323_v20  ;;  %v481_v60 = vcombine.low %v456_v50, %v464_v51 }
 0x185   : > { %v437_v61 = vrot.slane %v429_v56, %v1007_v26  ;;  %v444_v62 = vrot.slane %v430_v57, %v1007_v26  ;;  %v499_v63 = vcombine.low %v421_v54, %v428_v55  ;;  %v689_v0 = vcombine.high %v421_v54, %v428_v55 }
 0x186   : > { %v489_v1 = vcombine.low %v472_v58, %v480_v59  ;;  %v488_v6 = vrot.slane %v481_v60, %v1007_v26 }
 0x187   : > { %v506_v2 = vrot.slane %v499_v63, %v323_v20  ;;  %v514_v3 = vrot.slane %v689_v0, %v323_v20  ;;  %v515_v4 = vcombine.low %v437_v61, %v444_v62  ;;  %v690_v5 = vcombine.high %v437_v61, %v444_v62 }
 0x188   : > { %v496_v7 = vrot.slane %v489_v1, %v1007_v26 }
 0x189   : > { %v522_v8 = vrot.slane %v515_v4, %v323_v20  ;;  %v530_v9 = vrot.slane %v690_v5, %v323_v20  ;;  %v531_v10 = vcombine.low %v506_v2, %v514_v3 }
 0x18a   : > { %v497_v11 = vcombine.low %v488_v6, %v496_v7  ;;  %v498_v12 = vcombine.high %v488_v6, %v496_v7 }
 0x18b   : > { %v539_v13 = vcombine.low %v522_v8, %v530_v9  ;;  %v538_v14 = vrot.slane %v531_v10, %v1007_v26 }
 0x18c   : > { %550 = vst.msk [vmem:[%s186_s13] sm:$0xff] %vm549_vm2, %v497_v11  ;;  %552 = vst.msk [vmem:[%s186_s13 + $0x10] sm:$0xff] %vm549_vm2, %v498_v12 }
 0x18d   : > { %v546_v15 = vrot.slane %v539_v13, %v1007_v26 }
 0x18f   : > { %v547_v16 = vcombine.low %v538_v14, %v546_v15  ;;  %v548_v17 = vcombine.high %v538_v14, %v546_v15 }
 0x191   : > { %551 = vst.msk [vmem:[%s186_s13 + $0x8] sm:$0xff] %vm549_vm2, %v547_v16  ;;  %553 = vst.msk [vmem:[%s186_s13 + $0x18] sm:$0xff] %vm549_vm2, %v548_v17 }
 0x192   : > { %817 = shalt.err (!%p814_p9)
}
 0x193   : > { %s818_s21 = scalar_lea.hbm %s1031_s5, 512  ;;  %s822_s26 = scalar_lea.hbm %s1093_s2, 3072 }
 0x194   : > { %p819_p10 = scmp.ne.s32.totalorder %s1031_s5, %s818_s21  ;;  %p823_p13 = scmp.lt.u32.totalorder %s1031_s5, %s1093_s2 }
 0x195   : > { %p824_p0 = scmp.lt.u32.totalorder %s822_s26, %s818_s21  ;;  %p826_p2 = scmp.lt.u32.totalorder %s818_s21, %s1031_s5 }
 0x196   : > { %p820_p11 = pnand %p819_p10, %p973_p3 }
 0x197   : > { %p825_p1 = por %p824_p0, %p823_p13 }
 0x198   : > { %p821_p12 = pneg %p820_p11 }
 0x199   : > { %p827_p4 = por %p826_p2, %p825_p1 }
 0x19b   : > { %p828_p5 = pnand %p827_p4, %p821_p12 }
 0x19d   : > { %831 = shalt.err (!%p828_p5)
}
 0x19e   : > { %s905_s12 = smov 128   ;;  %s906_s13 = smov 8  }
 0x19f   : > { %727 = dma.vmem_to_hbm [thread:$0]  (%p973_p3), %s1033_s30, 512, %s1031_s5, %s1039_s6, %s905_s12, %s905_s12, %s906_s13  }
 0x1a0 PF: > { %p733_p6 = scmp.ge.s32.totalorder %s898_s16, 2  ;;  %s587_s3 = sand.u32 1, %s870_s9  }
 0x1a1   : > { %s588_s4 = scalar_lea.sflag [#allocation3], %s587_s3 }
 0x1a2   : > { %p730_p7 = pnand %p733_p6, %p982_p8 }
 0x1a4   : > { %865 = dma.done.wait (!%p730_p7), %s588_s4, 512  }
 0x1a5   : > { %867 = vsyncadd (!%p730_p7), %s588_s4, 4294966784  ;;  %s15_s16 = sadd.s32 1, %s898_s16   ;;  %s1096_s9 = smov %s874_s10 }
 0x1a6   : > { %p12_p9 = scmp.ge.s32.totalorder %s15_s16, 8   ;;  %s1097_s10 = smov %s878_s11 }
 0x1a7   : > { %s1098_s11 = smov %s991_s27  ;;  %s1099_s12 = smov %s890_s14 }
 0x1a8   : > { %s1100_s13 = smov %s894_s15  ;;  %s1101_s14 = smov %s1104_s19 }
 0x1a9   : > { %s1102_s15 = smov %s1108_s20  ;;  %14 = sbr.rel (!%p12_p9) target bundleno = 5 (0x5), region = 66 }
 0x1b0   :  { %593 = vsyncpa [#allocation3], 1 }
 0x1b1   :  { %595 = vsyncpa [#allocation3 + $0x1], 1 }

</bundles_post_ra>
